<compile_context>
chip_gen: v7x
topology: tpu7x:2x2x1
jax: 0.10.0
libtpu: 0.0.40
codegen_flags: <defaults>
</compile_context>

<pallas_src>
import functools

import jax
import jax.numpy as jnp
from jax.experimental import pallas as pl
from jax.experimental.pallas import tpu as pltpu


def _round_up(x, m):
    return ((x + m - 1) // m) * m


def _cdiv(a, b):
    return (a + b - 1) // b


def _mlp_kernel(x_ref, w1_ref, b1_ref, w2_ref, b2_ref, w3_ref, b3_ref, o_ref,
                *, chunk, act_dtype, mm_dtype):
    # Weights / biases loaded once per grid step (they are whole-array VMEM resident).
    w1, w2, w3 = w1_ref[...], w2_ref[...], w3_ref[...]
    b1, b2, b3 = b1_ref[...], b2_ref[...], b3_ref[...]

    n_chunks = x_ref.shape[0] // chunk
    # Statically-unrolled chunk loop: interleaves MXU matmuls of one chunk with EUP tanh
    # work of the previous chunk and keeps live f32 intermediates small.
    for c in range(n_chunks):
        r0 = c * chunk
        xs = x_ref[pl.ds(r0, chunk), :]
        h = jnp.dot(xs, w1, preferred_element_type=jnp.float32)
        h = jnp.tanh((h + b1).astype(act_dtype)).astype(mm_dtype)
        h = jnp.dot(h, w2, preferred_element_type=jnp.float32)
        h = jnp.tanh((h + b2).astype(act_dtype)).astype(mm_dtype)
        h = jnp.dot(h, w3, preferred_element_type=jnp.float32)
        h = jnp.tanh((h + b3).astype(act_dtype))
        o_ref[pl.ds(r0, chunk), :] = h.astype(o_ref.dtype)


@functools.partial(jax.jit,
                   static_argnames=("block_m", "chunk_m", "mm_dtype", "act_dtype"))
def _numerical_embedding_impl(x, w1, b1, w2, b2, w3, b3, *,
                              block_m, chunk_m, mm_dtype, act_dtype):
    n, in_dim = x.shape
    emb = w1.shape[1]
    out_dtype = x.dtype

    # Pad batch only to the sublane multiple (8); edge blocks are masked by Pallas.
    n_pad = _round_up(max(n, 8), 8)
    if n_pad != n:
        x = jnp.pad(x, ((0, n_pad - n), (0, 0)))

    # --- tile sizing -------------------------------------------------------
    cm = min(max(8, _round_up(chunk_m, 8)), n_pad)      # in-kernel chunk rows
    if n_pad <= cm:
        bm = cm = n_pad                                  # single block, single chunk
        grid_m = 1
    else:
        g = _cdiv(n_pad, max(_round_up(block_m, cm), cm))
        g = max(g, 2)                                    # >=2 grid steps -> v7x megacore
        bm = _round_up(_cdiv(n_pad, g), cm)              # multiple of the chunk size
        grid_m = _cdiv(n_pad, bm)

    # --- one-time dtype casts in the wrapper (not per tile) ----------------
    mm_dt = jnp.dtype(mm_dtype)
    if x.dtype != mm_dt:
        x = x.astype(mm_dt)
    if w1.dtype != mm_dt:
        w1, w2, w3 = (w.astype(mm_dt) for w in (w1, w2, w3))
    # biases stay f32: added to the f32 MXU accumulator.

    # --- right-sized VMEM limit --------------------------------------------
    w_bytes = (in_dim * emb + 2 * emb * emb) * mm_dt.itemsize + 3 * emb * 4
    io_bytes = 2 * bm * in_dim * mm_dt.itemsize + 2 * bm * emb * jnp.dtype(out_dtype).itemsize
    scratch_bytes = 6 * cm * emb * 4                     # live per-chunk f32 intermediates
    vmem_limit = int(min(max(2 * (w_bytes + io_bytes + scratch_bytes), 16 << 20), 64 << 20))

    # Weights / biases: whole arrays resident in VMEM (single buffer, loaded once).
    vmem_spec = pl.BlockSpec(memory_space=pltpu.MemorySpace.VMEM)

    out = pl.pallas_call(
        functools.partial(_mlp_kernel, chunk=cm, act_dtype=act_dtype, mm_dtype=mm_dtype),
        out_shape=jax.ShapeDtypeStruct((n_pad, emb), out_dtype),
        grid_spec=pltpu.PrefetchScalarGridSpec(
            num_scalar_prefetch=0,
            grid=(grid_m,),
            in_specs=[
                pl.BlockSpec((bm, in_dim), lambda i: (i, 0)),   # x tile (pipelined)
                vmem_spec,  # W1
                vmem_spec,  # b1
                vmem_spec,  # W2
                vmem_spec,  # b2
                vmem_spec,  # W3
                vmem_spec,  # b3
            ],
            out_specs=pl.BlockSpec((bm, emb), lambda i: (i, 0)),
        ),
        compiler_params=pltpu.CompilerParams(
            dimension_semantics=("parallel",),   # batch axis shardable across TCs (v7x)
            vmem_limit_bytes=vmem_limit,
        ),
    )(x, w1, b1, w2, b2, w3, b3)

    return out[:n]


def _default_act_dtype(mm_dtype):
    """bf16 tanh only where the VPU/EUP natively supports bf16 (v6e / v7x)."""
    if jnp.dtype(mm_dtype) == jnp.dtype(jnp.float32):
        return jnp.float32
    try:
        kind = jax.devices()[0].device_kind.lower()
    except Exception:  # pragma: no cover
        return jnp.float32
    if ("v6" in kind) or ("v7" in kind) or ("7x" in kind):
        return jnp.bfloat16
    return jnp.float32   # v5e and older: no bf16 VPU/EUP -> keep tanh in f32


def numerical_embedding_forward(x, w1, b1, w2, b2, w3, b3, *,
                                block_m=2048, chunk_m=256,
                                mm_dtype=jnp.bfloat16, act_dtype=None):
    """Fused 3-layer tanh MLP, y = tanh(tanh(tanh(x@W1+b1)@W2+b2)@W3+b3).

    x: (N, 32). Weights stored (in, out); biases (1, out). Returns (N, E) in x.dtype.
    block_m: batch tile per grid step (rounded to a multiple of chunk_m).
    chunk_m: rows per in-kernel sub-tile (matmul/tanh interleave granularity).
    mm_dtype: MXU input dtype (bf16 default; pass jnp.float32 for the exact path).
    act_dtype: dtype for bias-add + tanh; None -> auto (bf16 on v6e/v7x, else f32).
    """
    if act_dtype is None:
        act_dtype = _default_act_dtype(mm_dtype)
    return _numerical_embedding_impl(x, w1, b1, w2, b2, w3, b3,
                                     block_m=block_m, chunk_m=chunk_m,
                                     mm_dtype=mm_dtype, act_dtype=act_dtype)


def make_params(key, embedding_size, in_features=32, dtype=jnp.float32):
    """Deterministic synthetic parameters (same shapes as the PyTorch module)."""
    ks = jax.random.split(key, 6)
    scale1 = 1.0 / jnp.sqrt(in_features)
    scale2 = 1.0 / jnp.sqrt(embedding_size)
    w1 = jax.random.uniform(ks[0], (in_features, embedding_size), dtype, -scale1, scale1)
    b1 = jax.random.uniform(ks[1], (1, embedding_size), dtype, -scale1, scale1)
    w2 = jax.random.uniform(ks[2], (embedding_size, embedding_size), dtype, -scale2, scale2)
    b2 = jax.random.uniform(ks[3], (1, embedding_size), dtype, -scale2, scale2)
    w3 = jax.random.uniform(ks[4], (embedding_size, embedding_size), dtype, -scale2, scale2)
    b3 = jax.random.uniform(ks[5], (1, embedding_size), dtype, -scale2, scale2)
    return w1, b1, w2, b2, w3, b3


def reference_forward(x, w1, b1, w2, b2, w3, b3):
    h = jnp.tanh(x @ w1 + b1)
    h = jnp.tanh(h @ w2 + b2)
    h = jnp.tanh(h @ w3 + b3)
    return h


if __name__ == "__main__":
    embedding_size = 128
    batch = 20  # deliberately not a multiple of 8 to exercise ragged-batch handling

    key = jax.random.PRNGKey(0)
    kx, kp = jax.random.split(key)
    x = jax.random.normal(kx, (batch, 32), jnp.float32)
    params = make_params(kp, embedding_size)

    ref = reference_forward(x, *params)

    # Default fast path: bf16 MXU inputs (f32 accumulation), bf16 tanh on v6e/v7x.
    out = jax.block_until_ready(numerical_embedding_forward(x, *params))
    assert out.shape == (batch, embedding_size)
    assert out.dtype == x.dtype
    assert jnp.allclose(out, ref, atol=5e-2), "bf16 kernel too far from JAX reference"

    # Exact f32 path (still available via mm_dtype/act_dtype flags).
    out_f32 = jax.block_until_ready(
        numerical_embedding_forward(x, *params,
                                    mm_dtype=jnp.float32, act_dtype=jnp.float32))
    assert out_f32.shape == (batch, embedding_size)
    assert jnp.allclose(out_f32, ref, atol=2e-5, rtol=1e-5), "f32 kernel mismatch vs reference"

    print("KERNEL_OK")
</pallas_src>

<mosaic_0001>
module attributes {stable_mosaic.version = 11 : i64} {
  func.func @_mlp_kernel(%arg0: i32, %arg1: memref<24x32xbf16, #tpu.memory_space<vmem>>, %arg2: memref<32x128xbf16, #tpu.memory_space<vmem>>, %arg3: memref<1x128xf32, #tpu.memory_space<vmem>>, %arg4: memref<128x128xbf16, #tpu.memory_space<vmem>>, %arg5: memref<1x128xf32, #tpu.memory_space<vmem>>, %arg6: memref<128x128xbf16, #tpu.memory_space<vmem>>, %arg7: memref<1x128xf32, #tpu.memory_space<vmem>>, %arg8: memref<24x128xf32, #tpu.memory_space<vmem>>) attributes {dimension_semantics = [#tpu.dimension_semantics<parallel>], iteration_bounds = array<i64: 1>, scalar_prefetch = 0 : i64, scratch_operands = 0 : i64, tpu.core_type = #tpu.core_type<tc>, window_params = [{transform_indices = @transform_0, window_bounds = array<i64: 24, 32>}, {pipeline_mode = #tpu.pipeline_mode<synchronous>, transform_indices = @transform_1, window_bounds = array<i64: 32, 128>}, {pipeline_mode = #tpu.pipeline_mode<synchronous>, transform_indices = @transform_2, window_bounds = array<i64: 1, 128>}, {pipeline_mode = #tpu.pipeline_mode<synchronous>, transform_indices = @transform_3, window_bounds = array<i64: 128, 128>}, {pipeline_mode = #tpu.pipeline_mode<synchronous>, transform_indices = @transform_4, window_bounds = array<i64: 1, 128>}, {pipeline_mode = #tpu.pipeline_mode<synchronous>, transform_indices = @transform_5, window_bounds = array<i64: 128, 128>}, {pipeline_mode = #tpu.pipeline_mode<synchronous>, transform_indices = @transform_6, window_bounds = array<i64: 1, 128>}, {transform_indices = @transform_7, window_bounds = array<i64: 24, 128>}]} {
    %c0 = arith.constant 0 : index
    %c0_0 = arith.constant 0 : index
    %0 = vector.load %arg2[%c0, %c0_0] : memref<32x128xbf16, #tpu.memory_space<vmem>>, vector<32x128xbf16>
    %c0_1 = arith.constant 0 : index
    %c0_2 = arith.constant 0 : index
    %1 = vector.load %arg4[%c0_1, %c0_2] : memref<128x128xbf16, #tpu.memory_space<vmem>>, vector<128x128xbf16>
    %c0_3 = arith.constant 0 : index
    %c0_4 = arith.constant 0 : index
    %2 = vector.load %arg6[%c0_3, %c0_4] : memref<128x128xbf16, #tpu.memory_space<vmem>>, vector<128x128xbf16>
    %c0_5 = arith.constant 0 : index
    %c0_6 = arith.constant 0 : index
    %3 = vector.load %arg3[%c0_5, %c0_6] : memref<1x128xf32, #tpu.memory_space<vmem>>, vector<1x128xf32>
    %c0_7 = arith.constant 0 : index
    %c0_8 = arith.constant 0 : index
    %4 = vector.load %arg5[%c0_7, %c0_8] : memref<1x128xf32, #tpu.memory_space<vmem>>, vector<1x128xf32>
    %c0_9 = arith.constant 0 : index
    %c0_10 = arith.constant 0 : index
    %5 = vector.load %arg7[%c0_9, %c0_10] : memref<1x128xf32, #tpu.memory_space<vmem>>, vector<1x128xf32>
    %c0_11 = arith.constant 0 : index
    %c0_12 = arith.constant 0 : index
    %6 = vector.load %arg1[%c0_11, %c0_12] : memref<24x32xbf16, #tpu.memory_space<vmem>>, vector<24x32xbf16>
    %cst = arith.constant dense<0.000000e+00> : vector<24x128xf32>
    %7 = tpu.matmul %6, %0, %cst {dimension_numbers = #tpu.dot_dimension_numbers<[1], [0], [0], [1], [0, 0, 1, 1], [], []>} : vector<24x32xbf16>, vector<32x128xbf16>, vector<24x128xf32> -> vector<24x128xf32>
    %8 = vector.broadcast %3 : vector<1x128xf32> to vector<24x128xf32>
    %9 = arith.addf %7, %8 : vector<24x128xf32>
    %10 = math.tanh %9 : vector<24x128xf32>
    %11 = arith.truncf %10 : vector<24x128xf32> to vector<24x128xbf16>
    %cst_13 = arith.constant dense<0.000000e+00> : vector<24x128xf32>
    %12 = tpu.matmul %11, %1, %cst_13 {dimension_numbers = #tpu.dot_dimension_numbers<[1], [0], [0], [1], [0, 0, 1, 1], [], []>} : vector<24x128xbf16>, vector<128x128xbf16>, vector<24x128xf32> -> vector<24x128xf32>
    %13 = vector.broadcast %4 : vector<1x128xf32> to vector<24x128xf32>
    %14 = arith.addf %12, %13 : vector<24x128xf32>
    %15 = math.tanh %14 : vector<24x128xf32>
    %16 = arith.truncf %15 : vector<24x128xf32> to vector<24x128xbf16>
    %cst_14 = arith.constant dense<0.000000e+00> : vector<24x128xf32>
    %17 = tpu.matmul %16, %2, %cst_14 {dimension_numbers = #tpu.dot_dimension_numbers<[1], [0], [0], [1], [0, 0, 1, 1], [], []>} : vector<24x128xbf16>, vector<128x128xbf16>, vector<24x128xf32> -> vector<24x128xf32>
    %18 = vector.broadcast %5 : vector<1x128xf32> to vector<24x128xf32>
    %19 = arith.addf %17, %18 : vector<24x128xf32>
    %20 = math.tanh %19 : vector<24x128xf32>
    %c0_15 = arith.constant 0 : index
    %c0_16 = arith.constant 0 : index
    %21 = vector.load %arg8[%c0_15, %c0_16] : memref<24x128xf32, #tpu.memory_space<vmem>>, vector<24x128xf32>
    tpu.vector_store %arg8[%c0_15, %c0_16], %20 {strides = array<i32>} : memref<24x128xf32, #tpu.memory_space<vmem>>, vector<24x128xf32>,
    return
  }
  func.func @transform_0(%arg0: i32) -> (i32, i32) {
    %c0_i32 = arith.constant 0 : i32
    %c0_i32_0 = arith.constant 0 : i32
    return %arg0, %c0_i32 : i32, i32
  }
  func.func @transform_1(%arg0: i32) -> (i32, i32) {
    %c0_i32 = arith.constant 0 : i32
    %c0_i32_0 = arith.constant 0 : i32
    %c0_i32_1 = arith.constant 0 : i32
    return %c0_i32, %c0_i32_0 : i32, i32
  }
  func.func @transform_2(%arg0: i32) -> (i32, i32) {
    %c0_i32 = arith.constant 0 : i32
    %c0_i32_0 = arith.constant 0 : i32
    %c0_i32_1 = arith.constant 0 : i32
    return %c0_i32, %c0_i32_0 : i32, i32
  }
  func.func @transform_3(%arg0: i32) -> (i32, i32) {
    %c0_i32 = arith.constant 0 : i32
    %c0_i32_0 = arith.constant 0 : i32
    %c0_i32_1 = arith.constant 0 : i32
    return %c0_i32, %c0_i32_0 : i32, i32
  }
  func.func @transform_4(%arg0: i32) -> (i32, i32) {
    %c0_i32 = arith.constant 0 : i32
    %c0_i32_0 = arith.constant 0 : i32
    %c0_i32_1 = arith.constant 0 : i32
    return %c0_i32, %c0_i32_0 : i32, i32
  }
  func.func @transform_5(%arg0: i32) -> (i32, i32) {
    %c0_i32 = arith.constant 0 : i32
    %c0_i32_0 = arith.constant 0 : i32
    %c0_i32_1 = arith.constant 0 : i32
    return %c0_i32, %c0_i32_0 : i32, i32
  }
  func.func @transform_6(%arg0: i32) -> (i32, i32) {
    %c0_i32 = arith.constant 0 : i32
    %c0_i32_0 = arith.constant 0 : i32
    %c0_i32_1 = arith.constant 0 : i32
    return %c0_i32, %c0_i32_0 : i32, i32
  }
  func.func @transform_7(%arg0: i32) -> (i32, i32) {
    %c0_i32 = arith.constant 0 : i32
    %c0_i32_0 = arith.constant 0 : i32
    return %arg0, %c0_i32 : i32, i32
  }
}

</mosaic_0001>

<bundles_post_ra>
// kernel: _numerical_embedding_impl.1
= control target key start
LH: loop header
LB: loop body
LE: loop exit
PB: predicated region body
PF: predicated region fallthrough
CT: control target
= control target key end

     0   :  { %vm96_vm0 = vcmask 261120   ;;  %s673_s0 = inlined_call_operand.vmem [shape: bf16[24,32], index: 0, kind: input, shape index: {}]   ;;  %s674_s1 = inlined_call_operand.vmem [shape: bf16[32,128], index: 1, kind: input, shape index: {}]   ;;  %s675_s2 = inlined_call_operand.vmem [shape: f32[1,128], index: 2, kind: input, shape index: {}]   ;;  %s676_s3 = inlined_call_operand.vmem [shape: bf16[128,128], index: 3, kind: input, shape index: {}]   ;;  %s677_s4 = inlined_call_operand.vmem [shape: f32[1,128], index: 4, kind: input, shape index: {}]   ;;  %s678_s5 = inlined_call_operand.vmem [shape: bf16[128,128], index: 5, kind: input, shape index: {}]   ;;  %s679_s6 = inlined_call_operand.vmem [shape: f32[1,128], index: 6, kind: input, shape index: {}]   ;;  %s680_s7 = inlined_call_operand.hbm [shape: f32[24,128], index: 7, kind: output, shape index: {}]  }
   0x1   :  { %v487_v0 = vld [vmem:[%s674_s1] sm:$0xff]   ;;  %v488_v1 = vld [vmem:[%s674_s1 + $0x8] sm:$0xff]   ;;  %v493_v6 = vld [vmem:[%s676_s3 + $0x10] sm:$0xff]  }
   0x2   :  { %436 = vmatprep.subr.bf16.mxu0 %v487_v0  ;;  %v489_v2 = vld [vmem:[%s673_s0] sm:$0xff]   ;;  %v490_v3 = vld [vmem:[%s673_s0 + $0x8] ss:$0 sps:$4 sm:$0xff]  }
   0x3   :  { %437 = vmatpush3.bf16.msra.mxu0 %v487_v0  ;;  %440 = vmatprep.mubr.msk.bf16.mxu0 %vm96_vm0, %v489_v2  ;;  %v491_v4 = vld [vmem:[%s676_s3] sm:$0xff]   ;;  %v492_v5 = vld [vmem:[%s676_s3 + $0x8] sm:$0xff]  }
   0x4   :  { %438 = vmatprep.subr.bf16.mxu0 %v488_v1  ;;  %444 = vmatprep.subr.bf16.mxu1 %v491_v4 }
   0x5   :  { %445 = vmatpush3.bf16.msra.mxu1 %v491_v4 }
   0x6   :  { %446 = vmatprep.subr.bf16.mxu1 %v492_v5 }
   0x7   :  { %439 = vmatpush3.bf16.msra.mxu0 %v488_v1 }
   0x9   :  { %447 = vmatpush3.bf16.msra.mxu1 %v492_v5 }
   0xa   :  { %441 = vmatmul.mubr.msk.bf16.vlgmr.msra.gmra.mrb[0].mxu0 %vm96_vm0, %v490_v3  ;;  %448 = vmatprep.subr.bf16.mxu1 %v493_v6 }
   0xd   :  { %449 = vmatpush3.bf16.msra.mxu1 %v493_v6 }
   0xe   :  { %12 = vsyncpa [#allocation3], 0  ;;  %v494_v7 = vld [vmem:[%s676_s3 + $0x18] sm:$0xff]   ;;  %v495_v8 = vld [vmem:[%s676_s3 + $0x20] sm:$0xff]  }
   0xf   :  { %450 = vmatprep.subr.bf16.mxu1 %v494_v7  ;;  %v496_v9 = vld [vmem:[%s676_s3 + $0x28] sm:$0xff]   ;;  %v497_v10 = vld [vmem:[%s676_s3 + $0x30] sm:$0xff]   ;;  %v498_v11 = vld [vmem:[%s676_s3 + $0x38] sm:$0xff]  }
  0x10   :  { %v499_v12 = vld [vmem:[%s678_s5] sm:$0xff]   ;;  %v500_v13 = vld [vmem:[%s678_s5 + $0x8] sm:$0xff]   ;;  %v501_v14 = vld [vmem:[%s678_s5 + $0x10] sm:$0xff]  }
  0x11   :  { %451 = vmatpush3.bf16.msra.mxu1 %v494_v7  ;;  %464 = vmatprep.subr.bf16.mxu0 %v499_v12  ;;  %v387_v15 = vld [vmem:[%s675_s2] ss:$0 sm:$0xff]  ;;  %v502_v28 = vld [vmem:[%s678_s5 + $0x18] sm:$0xff]   ;;  %v504_v30 = vld [vmem:[%s678_s5 + $0x28] sm:$0xff]  }
  0x12   :  { %452 = vmatprep.subr.bf16.mxu1 %v495_v8  ;;  %465 = vmatpush3.bf16.msra.mxu0 %v499_v12  ;;  %v503_v29 = vld [vmem:[%s678_s5 + $0x20] sm:$0xff]   ;;  %v505_v31 = vld [vmem:[%s678_s5 + $0x30] sm:$0xff]   ;;  %v506_v32 = vld [vmem:[%s678_s5 + $0x38] sm:$0xff]  }
  0x13   :  { %466 = vmatprep.subr.bf16.mxu0 %v500_v13  ;;  %v394_v33 = vld [vmem:[%s677_s4] ss:$0 sm:$0xff]  ;;  %s549_s4 = smov [#allocation2]  }
  0x14   :  { %v403_v46 = vld [vmem:[%s679_s6] ss:$0 sm:$0xff]  ;;  %s376_s17 = sshll.u32 %s549_s4, 4  ;;  %s377_s17 = int_to_ptr.vmem [resolvable:$true] %s376_s17 }
  0x15   :  { %453 = vmatpush3.bf16.msra.mxu1 %v495_v8  ;;  %s525_s6 = scalar_lea.vmem %s377_s17, 384  ;;  %p530_p1 = scmp.lt.s32.totalorder %s377_s17, %s377_s17 }
  0x16   :  { %454 = vmatprep.subr.bf16.mxu1 %v496_v9  ;;  %467 = vmatpush3.bf16.msra.mxu0 %v500_v13  ;;  %p526_p0 = scmp.ne.s32.totalorder %s377_s17, %s525_s6  ;;  %p531_p2 = scmp.lt.s32.totalorder %s525_s6, %s525_s6 }
  0x17   :  { %468 = vmatprep.subr.bf16.mxu0 %v501_v14 }
  0x18   :  { %p532_p3 = por %p531_p2, %p530_p1 }
  0x19   :  { %455 = vmatpush3.bf16.msra.mxu1 %v496_v9 }
  0x1a   :  { %456 = vmatprep.subr.bf16.mxu1 %v497_v10  ;;  %469 = vmatpush3.bf16.msra.mxu0 %v501_v14  ;;  %p533_p4 = pnand %p532_p3, %p526_p0 }
  0x1b   :  { %470 = vmatprep.subr.bf16.mxu0 %v502_v28 }
  0x1d   :  { %457 = vmatpush3.bf16.msra.mxu1 %v497_v10 }
  0x1e   :  { %458 = vmatprep.subr.bf16.mxu1 %v498_v11  ;;  %471 = vmatpush3.bf16.msra.mxu0 %v502_v28 }
  0x1f   :  { %472 = vmatprep.subr.bf16.mxu0 %v503_v29 }
  0x21   :  { %459 = vmatpush3.bf16.msra.mxu1 %v498_v11 }
  0x22   :  { %473 = vmatpush3.bf16.msra.mxu0 %v503_v29 }
  0x23   :  { %474 = vmatprep.subr.bf16.mxu0 %v504_v30 }
  0x26   :  { %475 = vmatpush3.bf16.msra.mxu0 %v504_v30 }
  0x27   :  { %476 = vmatprep.subr.bf16.mxu0 %v505_v31 }
  0x2a   :  { %477 = vmatpush3.bf16.msra.mxu0 %v505_v31 }
  0x2b   :  { %478 = vmatprep.subr.bf16.mxu0 %v506_v32 }
  0x2e   :  { %479 = vmatpush3.bf16.msra.mxu0 %v506_v32 }
  0xdd   :  { %v442_v16 = vpop.f32.mrb[0].mxu0 }
  0xde   :  { %v146_v17 = vadd.f32 %v442_v16, %v387_v15  ;;  %v137_v18 = vpop.f32.mrb[1].mxu0 }
  0xdf   :  { %v138_v19 = vadd.f32 %v387_v15, %v137_v18  ;;  %v443_v20 = vpop.f32.mrb[2].mxu0 }
  0xe0   :  { %v140_v21 = vpop.f32.mrb[3].mxu0  ;;  %507 = vtanh.f32 %v146_v17 }
  0xe1   :  { %v141_v22 = vadd.f32 %v387_v15, %v140_v21  ;;  %509 = vtanh.f32 %v138_v19 }
  0xe3   :  { %511 = vtanh.f32 %v141_v22 }
  0xea   :  { %v508_v23 = vpop.eup %507 }
  0xeb   :  { %v510_v24 = vpop.eup %509  ;;  %v155_v27 = vpack.c.bf16 %v508_v23, %v508_v23 }
  0xed   :  { %v512_v25 = vpop.eup %511 }
  0xee   :  { %v154_v26 = vpack.c.bf16 %v512_v25, %v510_v24 }
  0xf0   :  { %460 = vmatprep.mubr.bf16.mxu1 %v154_v26 }
  0xf1   :  { %461 = vmatmul.mubr.bf16.vlgmr.msra.gmra.mrb[0].mxu1 %v155_v27 }
 0x1c4   :  { %v462_v34 = vpop.f32.mrb[0].mxu1 }
 0x1c5   :  { %v253_v35 = vadd.f32 %v462_v34, %v394_v33  ;;  %v244_v36 = vpop.f32.mrb[1].mxu1 }
 0x1c6   :  { %v245_v37 = vadd.f32 %v394_v33, %v244_v36  ;;  %v463_v38 = vpop.f32.mrb[2].mxu1 }
 0x1c7   :  { %v247_v39 = vpop.f32.mrb[3].mxu1  ;;  %513 = vtanh.f32 %v253_v35 }
 0x1c8   :  { %v248_v40 = vadd.f32 %v394_v33, %v247_v39  ;;  %515 = vtanh.f32 %v245_v37 }
 0x1ca   :  { %517 = vtanh.f32 %v248_v40 }
 0x1d1   :  { %v514_v41 = vpop.eup %513 }
 0x1d2   :  { %v516_v42 = vpop.eup %515  ;;  %v262_v45 = vpack.c.bf16 %v514_v41, %v514_v41 }
 0x1d4   :  { %v518_v43 = vpop.eup %517 }
 0x1d5   :  { %v261_v44 = vpack.c.bf16 %v518_v43, %v516_v42 }
 0x1d7   :  { %480 = vmatprep.mubr.bf16.mxu0 %v261_v44 }
 0x1d8   :  { %481 = vmatmul.mubr.bf16.vlgmr.msra.gmra.mrb[4].mxu0 %v262_v45 }
 0x2ab   :  { %v482_v47 = vpop.f32.mrb[4].mxu0 }
 0x2ac   :  { %v360_v48 = vadd.f32 %v482_v47, %v403_v46  ;;  %v351_v49 = vpop.f32.mrb[5].mxu0 }
 0x2ad   :  { %v352_v50 = vadd.f32 %v403_v46, %v351_v49  ;;  %v483_v51 = vpop.f32.mrb[6].mxu0 }
 0x2ae   :  { %519 = vtanh.f32 %v360_v48  ;;  %v354_v52 = vpop.f32.mrb[7].mxu0 }
 0x2af   :  { %521 = vtanh.f32 %v352_v50  ;;  %v355_v53 = vadd.f32 %v403_v46, %v354_v52 }
 0x2b1   :  { %523 = vtanh.f32 %v355_v53 }
 0x2b8   :  { %v520_v54 = vpop.eup %519 }
 0x2b9   :  { %v522_v55 = vpop.eup %521  ;;  %370 = vst [vmem:[#allocation2 + $0x10] sm:$0xff] %v520_v54 }
 0x2ba   :  { %368 = vst [vmem:[#allocation2] sm:$0xff] %v522_v55 }
 0x2bb   :  { %v524_v56 = vpop.eup %523 }
 0x2bc   :  { %369 = vst [vmem:[#allocation2 + $0x8] sm:$0xff] %v524_v56 }
 0x2bd   :  { %536 = shalt.err (!%p533_p4)
}
 0x2be   :  { %s537_s20 = scalar_lea.hbm %s680_s7, 384 }
 0x2bf   :  { %p538_p5 = scmp.ne.s32.totalorder %s680_s7, %s537_s20  ;;  %p541_p6 = scmp.lt.u32.totalorder %s537_s20, %s680_s7 }
 0x2c1   :  { %p543_p7 = pnand %p541_p6, %p538_p5 }
 0x2c3   :  { %546 = shalt.err (!%p543_p7)
}
 0x2c4   :  { %s550_s25 = smov 128   ;;  %s551_s26 = smov 8  }
 0x2c5   :  { %382 = dma.vmem_to_hbm [thread:$0]  %s377_s17, 384, %s680_s7, [#allocation3], %s550_s25, %s550_s25, %s551_s26  }
 0x2c6   :  { %547 = dma.done.wait [#allocation3], 384  }
 0x2c7   :  { %548 = vsyncadd [#allocation3], 4294966912 }
 0x2c8   :  { %386 = vsyncpa [#allocation3], 1 }

</bundles_post_ra>
